<compile_context>
chip_gen: v6e
topology: v6e:2x2x1
jax: 0.10.0
libtpu: 0.0.40
codegen_flags: <defaults>
</compile_context>

<pallas_src>
import jax
import jax.numpy as jnp
from jax.experimental import pallas as pl
from jax.experimental.pallas import tpu as pltpu


def _outconv_kernel(w_ref, b_ref, x_ref, o_ref):
    # w_ref: (C_out, C_in)   b_ref: (C_out, 1)
    # x_ref: (C_in, TM)      o_ref: (C_out, TM)
    c_out, c_in = w_ref.shape
    tm = x_ref.shape[1]

    x = x_ref[...].astype(jnp.float32)
    b = b_ref[...].astype(jnp.float32)

    if c_in <= 16:
        # Tiny contraction: unrolled broadcast multiply-adds on the VPU.
        # A K=4 matmul uses a vanishing fraction of the MXU and adds
        # MXU push/pop latency per tile; the kernel is HBM-bound anyway.
        w = w_ref[...].astype(jnp.float32)
        acc = jnp.broadcast_to(b, (c_out, tm))
        for ci in range(c_in):
            acc = acc + w[:, ci:ci + 1] * x[ci:ci + 1, :]
    else:
        acc = jnp.dot(w_ref[...].astype(jnp.float32), x,
                      preferred_element_type=jnp.float32) + b

    o_ref[...] = acc.astype(o_ref.dtype)


def outconv_pallas(x_nchw, weight, bias, *, tm=None):
    """1x1 conv. x_nchw: (N, C_in, H, W); weight: (C_out, C_in, 1, 1); bias: (C_out,)."""
    n, c_in, h, w = x_nchw.shape
    c_out = weight.shape[0]
    m = n * h * w
    dtype = x_nchw.dtype
    itemsize = jnp.dtype(dtype).itemsize

    # Channel-major glue: X (C_in, M). Only the two small leading dims swap;
    # H, W stay contiguous (cheap strided copy, not a lane-shuffling transpose).
    x2d = jnp.transpose(x_nchw, (1, 0, 2, 3)).reshape(c_in, m)
    w2d = weight.reshape(c_out, c_in)
    b2d = bias.reshape(c_out, 1)

    # Tile M. Budget ~8 MiB for the double-buffered x/out tiles.
    if tm is None:
        vmem_budget = 8 * 1024 * 1024
        bytes_per_col = itemsize * (c_in + c_out)
        tm_cap = max(128, (vmem_budget // (2 * bytes_per_col)) // 128 * 128)
        m_aligned = ((m + 127) // 128) * 128
        tm = min(4096, tm_cap, m_aligned)

    # Pad M so every block is full-sized and lane-aligned (keeps (8,128) rule
    # satisfied and the last tile's stores unmasked).
    m_pad = ((m + tm - 1) // tm) * tm
    if m_pad != m:
        x2d = jnp.pad(x2d, ((0, 0), (0, m_pad - m)))

    grid = (m_pad // tm,)
    cost = pl.CostEstimate(
        flops=2 * m_pad * c_in * c_out,
        transcendentals=0,
        bytes_accessed=itemsize * (m_pad * (c_in + c_out) + c_out * (c_in + 1)),
    )

    out2d = pl.pallas_call(
        _outconv_kernel,
        out_shape=jax.ShapeDtypeStruct((c_out, m_pad), dtype),
        grid_spec=pltpu.PrefetchScalarGridSpec(
            num_scalar_prefetch=0,
            grid=grid,
            in_specs=[
                pl.BlockSpec((c_out, c_in), lambda i: (0, 0)),   # W: resident
                pl.BlockSpec((c_out, 1), lambda i: (0, 0)),      # b: resident
                pl.BlockSpec((c_in, tm), lambda i: (0, i)),      # X: tiled over M
            ],
            out_specs=pl.BlockSpec((c_out, tm), lambda i: (0, i)),
        ),
        compiler_params=pltpu.CompilerParams(
            dimension_semantics=("parallel",)),  # v7x: shard M across both TCs
        cost_estimate=cost,
    )(w2d, b2d, x2d)

    # (C_out, M) -> (N, C_out, H, W): again only two small leading dims swap.
    return jnp.transpose(out2d[:, :m].reshape(c_out, n, h, w), (1, 0, 2, 3))


def _reference(x, weight, bias):
    c_out, c_in = weight.shape[0], weight.shape[1]
    y = jnp.einsum("nchw,oc->nohw", x, weight.reshape(c_out, c_in))
    return y + bias.reshape(1, c_out, 1, 1)


if __name__ == "__main__":
    key = jax.random.PRNGKey(0)
    k_x, k_w, k_b = jax.random.split(key, 3)

    # Primary shape: batch=2, in_channels=4, out_channels=8, spatial=16.
    batch, in_channels, out_channels, spatial = 2, 4, 8, 16
    x = jax.random.normal(k_x, (batch, in_channels, spatial, spatial),
                          dtype=jnp.float32)
    weight = jax.random.normal(k_w, (out_channels, in_channels, 1, 1),
                               dtype=jnp.float32) * 0.1
    bias = jax.random.normal(k_b, (out_channels,), dtype=jnp.float32) * 0.1

    y = outconv_pallas(x, weight, bias)
    jax.block_until_ready(y)
    assert y.shape == (batch, out_channels, spatial, spatial)
    assert jnp.allclose(y, _reference(x, weight, bias), atol=1e-5, rtol=1e-5)

    # Extra check: ragged M (needs padding) with a multi-tile pipelined grid.
    x2 = jax.random.normal(k_x, (2, 4, 40, 40), dtype=jnp.float32)
    y2 = outconv_pallas(x2, weight, bias, tm=1024)
    jax.block_until_ready(y2)
    assert jnp.allclose(y2, _reference(x2, weight, bias), atol=1e-5, rtol=1e-5)

    # Extra check: larger channel counts take the MXU-dot path.
    kx3, kw3, kb3 = jax.random.split(jax.random.PRNGKey(1), 3)
    x3 = jax.random.normal(kx3, (1, 64, 16, 16), dtype=jnp.float32)
    w3 = jax.random.normal(kw3, (32, 64, 1, 1), dtype=jnp.float32) * 0.1
    b3 = jax.random.normal(kb3, (32,), dtype=jnp.float32) * 0.1
    y3 = outconv_pallas(x3, w3, b3)
    jax.block_until_ready(y3)
    # Looser tolerance: f32 MXU dots may use reduced-precision passes by default.
    assert jnp.allclose(y3, _reference(x3, w3, b3), atol=2e-2, rtol=2e-2)

    print("KERNEL_OK")
</pallas_src>

<mosaic_0001>
module attributes {stable_mosaic.version = 11 : i64} {
  func.func @_outconv_kernel(%arg0: i32, %arg1: memref<8x4xf32, #tpu.memory_space<vmem>>, %arg2: memref<8x1xf32, #tpu.memory_space<vmem>>, %arg3: memref<4x512xf32, #tpu.memory_space<vmem>>, %arg4: memref<8x512xf32, #tpu.memory_space<vmem>>) attributes {dimension_semantics = [#tpu.dimension_semantics<parallel>], iteration_bounds = array<i64: 1>, scalar_prefetch = 0 : i64, scratch_operands = 0 : i64, tpu.core_type = #tpu.core_type<tc>, window_params = [{pipeline_mode = #tpu.pipeline_mode<synchronous>, transform_indices = @transform_0, window_bounds = array<i64: 8, 4>}, {pipeline_mode = #tpu.pipeline_mode<synchronous>, transform_indices = @transform_1, window_bounds = array<i64: 8, 1>}, {transform_indices = @transform_2, window_bounds = array<i64: 4, 512>}, {transform_indices = @transform_3, window_bounds = array<i64: 8, 512>}]} {
    %c0 = arith.constant 0 : index
    %c0_0 = arith.constant 0 : index
    %0 = vector.load %arg3[%c0, %c0_0] : memref<4x512xf32, #tpu.memory_space<vmem>>, vector<4x512xf32>
    %c0_1 = arith.constant 0 : index
    %c0_2 = arith.constant 0 : index
    %1 = vector.load %arg2[%c0_1, %c0_2] : memref<8x1xf32, #tpu.memory_space<vmem>>, vector<8x1xf32>
    %c0_3 = arith.constant 0 : index
    %c0_4 = arith.constant 0 : index
    %2 = vector.load %arg1[%c0_3, %c0_4] : memref<8x4xf32, #tpu.memory_space<vmem>>, vector<8x4xf32>
    %3 = vector.shape_cast %1 : vector<8x1xf32> to vector<8x1xf32>
    %4 = vector.broadcast %3 : vector<8x1xf32> to vector<8x512xf32>
    %5 = vector.extract_strided_slice %2 {offsets = [0, 0], sizes = [8, 1], strides = [1, 1]} : vector<8x4xf32> to vector<8x1xf32>
    %6 = vector.extract_strided_slice %0 {offsets = [0, 0], sizes = [1, 512], strides = [1, 1]} : vector<4x512xf32> to vector<1x512xf32>
    %7 = vector.broadcast %5 : vector<8x1xf32> to vector<8x512xf32>
    %8 = vector.broadcast %6 : vector<1x512xf32> to vector<8x512xf32>
    %9 = arith.mulf %7, %8 : vector<8x512xf32>
    %10 = arith.addf %4, %9 : vector<8x512xf32>
    %11 = vector.extract_strided_slice %2 {offsets = [0, 1], sizes = [8, 1], strides = [1, 1]} : vector<8x4xf32> to vector<8x1xf32>
    %12 = vector.extract_strided_slice %0 {offsets = [1, 0], sizes = [1, 512], strides = [1, 1]} : vector<4x512xf32> to vector<1x512xf32>
    %13 = vector.broadcast %11 : vector<8x1xf32> to vector<8x512xf32>
    %14 = vector.broadcast %12 : vector<1x512xf32> to vector<8x512xf32>
    %15 = arith.mulf %13, %14 : vector<8x512xf32>
    %16 = arith.addf %10, %15 : vector<8x512xf32>
    %17 = vector.extract_strided_slice %2 {offsets = [0, 2], sizes = [8, 1], strides = [1, 1]} : vector<8x4xf32> to vector<8x1xf32>
    %18 = vector.extract_strided_slice %0 {offsets = [2, 0], sizes = [1, 512], strides = [1, 1]} : vector<4x512xf32> to vector<1x512xf32>
    %19 = vector.broadcast %17 : vector<8x1xf32> to vector<8x512xf32>
    %20 = vector.broadcast %18 : vector<1x512xf32> to vector<8x512xf32>
    %21 = arith.mulf %19, %20 : vector<8x512xf32>
    %22 = arith.addf %16, %21 : vector<8x512xf32>
    %23 = vector.extract_strided_slice %2 {offsets = [0, 3], sizes = [8, 1], strides = [1, 1]} : vector<8x4xf32> to vector<8x1xf32>
    %24 = vector.extract_strided_slice %0 {offsets = [3, 0], sizes = [1, 512], strides = [1, 1]} : vector<4x512xf32> to vector<1x512xf32>
    %25 = vector.broadcast %23 : vector<8x1xf32> to vector<8x512xf32>
    %26 = vector.broadcast %24 : vector<1x512xf32> to vector<8x512xf32>
    %27 = arith.mulf %25, %26 : vector<8x512xf32>
    %28 = arith.addf %22, %27 : vector<8x512xf32>
    %c0_5 = arith.constant 0 : index
    %c0_6 = arith.constant 0 : index
    %29 = vector.load %arg4[%c0_5, %c0_6] : memref<8x512xf32, #tpu.memory_space<vmem>>, vector<8x512xf32>
    tpu.vector_store %arg4[%c0_5, %c0_6], %28 {strides = array<i32>} : memref<8x512xf32, #tpu.memory_space<vmem>>, vector<8x512xf32>,
    return
  }
  func.func @transform_0(%arg0: i32) -> (i32, i32) {
    %c0_i32 = arith.constant 0 : i32
    %c0_i32_0 = arith.constant 0 : i32
    %c0_i32_1 = arith.constant 0 : i32
    return %c0_i32, %c0_i32_0 : i32, i32
  }
  func.func @transform_1(%arg0: i32) -> (i32, i32) {
    %c0_i32 = arith.constant 0 : i32
    %c0_i32_0 = arith.constant 0 : i32
    %c0_i32_1 = arith.constant 0 : i32
    return %c0_i32, %c0_i32_0 : i32, i32
  }
  func.func @transform_2(%arg0: i32) -> (i32, i32) {
    %c0_i32 = arith.constant 0 : i32
    %c0_i32_0 = arith.constant 0 : i32
    return %c0_i32, %arg0 : i32, i32
  }
  func.func @transform_3(%arg0: i32) -> (i32, i32) {
    %c0_i32 = arith.constant 0 : i32
    %c0_i32_0 = arith.constant 0 : i32
    return %c0_i32, %arg0 : i32, i32
  }
}

</mosaic_0001>

<bundles_post_ra>
// kernel: tpu_custom_call.1
= control target key start
LH: loop header
LB: loop body
LE: loop exit
PB: predicated region body
PF: predicated region fallthrough
CT: control target
= control target key end

     0   :  { %v268_v1 = vmov 0   ;;  %v269_v2 = vmov 1   ;;  %s316_s0 = inlined_call_operand.vmem [shape: f32[8,4], index: 0, kind: input, shape index: {}]   ;;  %s317_s1 = inlined_call_operand.vmem [shape: f32[8,1], index: 1, kind: input, shape index: {}]   ;;  %s318_s2 = inlined_call_operand.vmem [shape: f32[4,512], index: 2, kind: input, shape index: {}]   ;;  %s319_s3 = inlined_call_operand.hbm [shape: f32[8,512], index: 3, kind: output, shape index: {}]  }
   0x1   :  { %v18_v0 = vld [vmem:[%s316_s0] sm:$0xff]  ;;  %242 = vset.pattern.permute.xlu0 %v268_v1  ;;  %243 = vset.pattern.permute.xlu1 %v269_v2 }
   0x2   :  { %8 = vsyncpa [#allocation3], 0  ;;  %26 = vperm.xlu0 %242, %v18_v0   ;;  %76 = vperm.xlu1 %243, %v18_v0   ;;  %v17_v3 = vld [vmem:[%s317_s1] sm:$0xff]  ;;  %v270_v4 = vmov 2   ;;  %v271_v5 = vmov 3   ;;  %v31_v6 = vlaneseq  ;;  %v16_v11 = vld [vmem:[%s318_s2 + $0x8] sm:$0xff] }
   0x3   :  { %v15_v10 = vld [vmem:[%s318_s2] sm:$0xff]  ;;  %s272_s1 = smov [#allocation2]  }
   0x4   :  { %v32_v7 = vshrl.u32 %v31_v6, 7  ;;  %s229_s2 = sshll.u32 %s272_s1, 4  ;;  %s230_s2 = int_to_ptr.vmem [resolvable:$true] %s229_s2 }
   0x5   :  { %s246_s19 = scalar_lea.vmem %s230_s2, 512  ;;  %p251_p1 = scmp.lt.s32.totalorder %s230_s2, %s230_s2 }
   0x6   :  { %21 = vperm.xlu0 %242, %v17_v3   ;;  %244 = vset.pattern.permute.xlu1 %v270_v4  ;;  %v33_v8 = vsub.s32 0, %v32_v7  ;;  %v37_v9 = vsub.s32 4, %v32_v7  ;;  %v81_v12 = vsub.s32 1, %v32_v7  ;;  %v85_v13 = vsub.s32 5, %v32_v7  ;;  %p247_p0 = scmp.ne.s32.totalorder %s230_s2, %s246_s19  ;;  %p252_p2 = scmp.lt.s32.totalorder %s246_s19, %s246_s19 }
   0x7   :  { %124 = vperm.xlu1 %244, %v18_v0   ;;  %v129_v14 = vsub.s32 2, %v32_v7  ;;  %v133_v15 = vsub.s32 6, %v32_v7  ;;  %v305_v16 = vsub.s32 3, %v32_v7  ;;  %v181_v17 = vsub.s32 7, %v32_v7 }
   0x8   :  { %v34_v18 = vrot.slane %v15_v10, %v33_v8  ;;  %v38_v19 = vrot.slane %v15_v10, %v37_v9  ;;  %v42_v20 = vrot.slane %v16_v11, %v33_v8  ;;  %v46_v21 = vrot.slane %v16_v11, %v37_v9  ;;  %p253_p3 = por %p252_p2, %p251_p1 }
   0x9   :  { %v82_v22 = vrot.slane %v15_v10, %v81_v12  ;;  %v86_v23 = vrot.slane %v15_v10, %v85_v13  ;;  %v90_v24 = vrot.slane %v16_v11, %v81_v12  ;;  %v94_v25 = vrot.slane %v16_v11, %v85_v13 }
   0xa   :  { %245 = vset.pattern.permute.xlu0 %v271_v5  ;;  %v130_v26 = vrot.slane %v15_v10, %v129_v14  ;;  %v134_v27 = vrot.slane %v15_v10, %v133_v15  ;;  %v138_v28 = vrot.slane %v16_v11, %v129_v14  ;;  %v142_v29 = vrot.slane %v16_v11, %v133_v15  ;;  %p254_p4 = pnand %p253_p3, %p247_p0 }
   0xb   :  { %172 = vperm.xlu0 %245, %v18_v0   ;;  %v178_v30 = vrot.slane %v15_v10, %v305_v16  ;;  %v182_v31 = vrot.slane %v15_v10, %v181_v17  ;;  %v186_v32 = vrot.slane %v16_v11, %v305_v16  ;;  %v190_v33 = vrot.slane %v16_v11, %v181_v17 }
   0xc   :  { %v54_v34 = vrot.slane %v34_v18, %v33_v8  ;;  %v58_v35 = vrot.slane %v38_v19, %v33_v8  ;;  %v62_v36 = vrot.slane %v42_v20, %v33_v8  ;;  %v66_v37 = vrot.slane %v46_v21, %v33_v8 }
   0xd   :  { %v102_v40 = vrot.slane %v82_v22, %v81_v12  ;;  %v106_v41 = vrot.slane %v86_v23, %v81_v12  ;;  %v110_v42 = vrot.slane %v90_v24, %v81_v12  ;;  %v114_v43 = vrot.slane %v94_v25, %v81_v12 }
   0xe   :  { %v150_v44 = vrot.slane %v130_v26, %v129_v14  ;;  %v154_v45 = vrot.slane %v134_v27, %v129_v14  ;;  %v158_v46 = vrot.slane %v138_v28, %v129_v14  ;;  %v162_v47 = vrot.slane %v142_v29, %v129_v14 }
   0xf   :  { %v198_v48 = vrot.slane %v178_v30, %v305_v16  ;;  %v202_v49 = vrot.slane %v182_v31, %v305_v16  ;;  %v206_v50 = vrot.slane %v186_v32, %v305_v16  ;;  %v210_v51 = vrot.slane %v190_v33, %v305_v16 }
  0x7d   :  { %v27_v38 = vpop.permute.xlu0 %26  ;;  %v77_v39 = vpop.permute.xlu1 %76 }
  0x7e   :  { %v67_v52 = vmul.f32 %v54_v34, %v27_v38  ;;  %v68_v53 = vmul.f32 %v58_v35, %v27_v38  ;;  %v69_v54 = vmul.f32 %v62_v36, %v27_v38  ;;  %v70_v55 = vmul.f32 %v66_v37, %v27_v38 }
  0x7f   :  { %v115_v56 = vmul.f32 %v102_v40, %v77_v39  ;;  %v116_v57 = vmul.f32 %v106_v41, %v77_v39  ;;  %v117_v58 = vmul.f32 %v110_v42, %v77_v39  ;;  %v118_v59 = vmul.f32 %v114_v43, %v77_v39 }
  0x81   :  { %v22_v60 = vpop.permute.xlu0 %21 }
  0x82   :  { %v71_v61 = vadd.f32 %v67_v52, %v22_v60  ;;  %v72_v62 = vadd.f32 %v68_v53, %v22_v60  ;;  %v73_v63 = vadd.f32 %v69_v54, %v22_v60  ;;  %v74_v0 = vadd.f32 %v70_v55, %v22_v60  ;;  %v125_v1 = vpop.permute.xlu1 %124 }
  0x83   :  { %v163_v2 = vmul.f32 %v150_v44, %v125_v1  ;;  %v164_v3 = vmul.f32 %v154_v45, %v125_v1  ;;  %v165_v4 = vmul.f32 %v158_v46, %v125_v1  ;;  %v166_v5 = vmul.f32 %v162_v47, %v125_v1 }
  0x84   :  { %v119_v6 = vadd.f32 %v115_v56, %v71_v61  ;;  %v120_v7 = vadd.f32 %v116_v57, %v72_v62  ;;  %v121_v8 = vadd.f32 %v117_v58, %v73_v63  ;;  %v122_v9 = vadd.f32 %v118_v59, %v74_v0 }
  0x86   :  { %v167_v10 = vadd.f32 %v163_v2, %v119_v6  ;;  %v168_v11 = vadd.f32 %v164_v3, %v120_v7  ;;  %v169_v12 = vadd.f32 %v165_v4, %v121_v8  ;;  %v170_v13 = vadd.f32 %v166_v5, %v122_v9  ;;  %v173_v14 = vpop.permute.xlu0 %172 }
  0x87   :  { %v211_v15 = vmul.f32 %v198_v48, %v173_v14  ;;  %v212_v16 = vmul.f32 %v202_v49, %v173_v14  ;;  %v213_v17 = vmul.f32 %v206_v50, %v173_v14  ;;  %v214_v18 = vmul.f32 %v210_v51, %v173_v14 }
  0x89   :  { %v215_v19 = vadd.f32 %v211_v15, %v167_v10  ;;  %v216_v20 = vadd.f32 %v212_v16, %v168_v11  ;;  %v217_v21 = vadd.f32 %v213_v17, %v169_v12  ;;  %v218_v22 = vadd.f32 %v214_v18, %v170_v13 }
  0x8b   :  { %219 = vst [vmem:[#allocation2] sm:$0xff] %v215_v19  ;;  %220 = vst [vmem:[#allocation2 + $0x8] sm:$0xff] %v216_v20 }
  0x8c   :  { %221 = vst [vmem:[#allocation2 + $0x10] sm:$0xff] %v217_v21  ;;  %222 = vst [vmem:[#allocation2 + $0x18] sm:$0xff] %v218_v22 }
  0x8d   :  { %257 = shalt.err (!%p254_p4)
}
  0x8e   :  { %232 = dma.vmem_to_hbm [thread:$0]  %s230_s2, 512, %s319_s3, [#allocation3]  }
  0x8f   :  { %266 = dma.done.wait [#allocation3], 512  }
  0x90   :  { %267 = vsyncadd [#allocation3], 4294966784 }
  0x91   :  { %236 = vsyncpa [#allocation3], 1 }

</bundles_post_ra>
